<compile_context>
chip_gen: v6e
topology: v6e:2x2x1
jax: 0.10.0
libtpu: 0.0.40
codegen_flags: <defaults>
</compile_context>

<pallas_src>
import jax
import jax.numpy as jnp
from jax.experimental import pallas as pl
from jax.experimental.pallas import tpu as pltpu

# Lane-dense slab widths to try (largest one dividing the element count wins).
_WIDTH_CANDIDATES = (4096, 2048, 1024, 512, 256, 128)
# ~4 MiB f32 tiles for the streamed two-phase path (amortizes the ~0.35 us
# per-grid-step overhead to <~10% at HBM roofline).
_MAX_TILE_ELEMS = 1024 * 1024
# Fully-VMEM-resident single-pass path for anything up to 1M elements.
_RESIDENT_MAX_ELEMS = 1024 * 1024
# Generous scoped-VMEM limit: fits all buffers with margin and is safe on
# v5e/v6e (128 MiB physical) and v7x (64 MiB physical).
_VMEM_LIMIT_BYTES = 48 * 1024 * 1024


def _resident_kernel(x_ref, o_ref):
    # Whole tensor resident in VMEM: reduce + normalize in one pass.
    x = x_ref[...].astype(jnp.float32)
    mn = jnp.min(x)
    mx = jnp.max(x)
    inv = 1.0 / (mx - mn)  # matches torch: constant input -> inf/NaN
    o_ref[...] = ((x - mn) * inv).astype(o_ref.dtype)


def _two_phase_kernel(x_ref, o_ref, acc_min, acc_max, stat):
    # grid = (2, num_tiles): phase 0 = vector min/max accumulation,
    # phase 1 = elementwise normalize with the finalized scalars.
    phase = pl.program_id(0)
    i = pl.program_id(1)
    n_tiles = pl.num_programs(1)

    @pl.when(phase == 0)
    def _():
        tile = x_ref[...].astype(jnp.float32)

        @pl.when(i == 0)
        def _():
            acc_min[...] = tile
            acc_max[...] = tile

        @pl.when(i > 0)
        def _():
            acc_min[...] = jnp.minimum(acc_min[...], tile)
            acc_max[...] = jnp.maximum(acc_max[...], tile)

        # One-time cross-lane/sublane reduction + SMEM scalar write (epilogue).
        @pl.when(i == n_tiles - 1)
        def _():
            stat[0] = jnp.min(acc_min[...])
            stat[1] = jnp.max(acc_max[...])

    @pl.when(phase == 1)
    def _():
        mn = stat[0]
        inv = 1.0 / (stat[1] - mn)  # scalar; elementwise path is pure sub+mul
        o_ref[...] = ((x_ref[...].astype(jnp.float32) - mn) * inv).astype(o_ref.dtype)


def min_max_norm(x):
    """Pallas implementation of MinMaxNorm.forward for an arbitrary-shape array."""
    orig_shape = x.shape
    orig_dtype = x.dtype
    xf = x.reshape(-1)
    total = xf.shape[0]

    # Pick the widest lane-dense layout that reshapes copy-free.
    width = 128
    for w in _WIDTH_CANDIDATES:
        if total % w == 0:
            width = w
            break
    rows = -(-total // width)

    resident = rows * width <= _RESIDENT_MAX_ELEMS
    if resident:
        row_tile = rows
    else:
        row_tile = min(rows, max(8, (_MAX_TILE_ELEMS // width) // 8 * 8))
    num_tiles = -(-rows // row_tile)
    rows_padded = num_tiles * row_tile
    padded_total = rows_padded * width

    if padded_total != total:
        # Only for ragged element counts (uncommon for NCHW): pad with x[0]
        # (neutral for min/max); the padded outputs are sliced away below.
        pad = jnp.full((padded_total - total,), xf[0], dtype=orig_dtype)
        xf = jnp.concatenate([xf, pad])
    x2d = xf.reshape(rows_padded, width)

    if resident:
        y2d = pl.pallas_call(
            _resident_kernel,
            out_shape=jax.ShapeDtypeStruct((rows_padded, width), orig_dtype),
            grid=(1,),
            in_specs=[pl.BlockSpec((rows_padded, width), lambda i: (0, 0))],
            out_specs=pl.BlockSpec((rows_padded, width), lambda i: (0, 0)),
            compiler_params=pltpu.CompilerParams(
                vmem_limit_bytes=_VMEM_LIMIT_BYTES,
            ),
        )(x2d)
    else:
        # TODO(synk): on v7x, split phase 0 across the 2 TensorCores with a
        # leading "parallel" axis + per-core partials for full HBM bandwidth.
        y2d = pl.pallas_call(
            _two_phase_kernel,
            out_shape=jax.ShapeDtypeStruct((rows_padded, width), orig_dtype),
            grid_spec=pltpu.PrefetchScalarGridSpec(
                num_scalar_prefetch=0,
                grid=(2, num_tiles),
                in_specs=[pl.BlockSpec((row_tile, width), lambda p, i: (i, 0))],
                # i*p: output block stays parked at (0,0) during phase 0 (no
                # garbage writebacks); phase 1 walks the blocks normally.
                out_specs=pl.BlockSpec((row_tile, width), lambda p, i: (i * p, 0)),
                scratch_shapes=[
                    pltpu.VMEM((row_tile, width), jnp.float32),  # acc_min
                    pltpu.VMEM((row_tile, width), jnp.float32),  # acc_max
                    pltpu.SMEM((2,), jnp.float32),               # [min, max]
                ],
            ),
            compiler_params=pltpu.CompilerParams(
                dimension_semantics=("arbitrary", "arbitrary"),
                vmem_limit_bytes=_VMEM_LIMIT_BYTES,
            ),
        )(x2d)

    y = y2d.reshape(-1)
    if padded_total != total:
        y = y[:total]
    return y.reshape(orig_shape)


if __name__ == "__main__":
    key = jax.random.PRNGKey(0)

    # Small NCHW input consistent with a conv-style module (resident path).
    x = jax.random.normal(key, (2, 4, 16, 16), dtype=jnp.float32)
    y = jax.block_until_ready(min_max_norm(x))
    ref = (x - jnp.min(x)) / (jnp.max(x) - jnp.min(x))
    assert y.shape == x.shape
    assert y.dtype == x.dtype
    assert jnp.allclose(y, ref, atol=1e-6), "mismatch vs reference (resident path)"

    # Larger input to exercise the streamed two-phase path as well.
    x2 = jax.random.normal(jax.random.PRNGKey(1), (4, 8, 256, 256), dtype=jnp.float32)
    y2 = jax.block_until_ready(min_max_norm(x2))
    ref2 = (x2 - jnp.min(x2)) / (jnp.max(x2) - jnp.min(x2))
    assert y2.shape == x2.shape
    assert jnp.allclose(y2, ref2, atol=1e-6), "mismatch vs reference (tiled path)"

    print("KERNEL_OK")
</pallas_src>

<mosaic_0001>
module attributes {stable_mosaic.version = 11 : i64} {
  func.func @_resident_kernel(%arg0: i32, %arg1: memref<1x2048xf32, #tpu.memory_space<vmem>>, %arg2: memref<1x2048xf32, #tpu.memory_space<vmem>>) attributes {dimension_semantics = [#tpu.dimension_semantics<arbitrary>], iteration_bounds = array<i64: 1>, scalar_prefetch = 0 : i64, scratch_operands = 0 : i64, tpu.core_type = #tpu.core_type<tc>, window_params = [{pipeline_mode = #tpu.pipeline_mode<synchronous>, transform_indices = @transform_0, window_bounds = array<i64: 1, 2048>}, {pipeline_mode = #tpu.pipeline_mode<synchronous>, transform_indices = @transform_1, window_bounds = array<i64: 1, 2048>}]} {
    %c0 = arith.constant 0 : index
    %c0_0 = arith.constant 0 : index
    %0 = vector.load %arg1[%c0, %c0_0] : memref<1x2048xf32, #tpu.memory_space<vmem>>, vector<1x2048xf32>
    %1 = vector.shape_cast %0 : vector<1x2048xf32> to vector<1x1x2048xf32>
    %cst = arith.constant dense<0x7F800000> : vector<1xf32>
    %2 = vector.multi_reduction <minimumf>, %1, %cst [1, 2] : vector<1x1x2048xf32> to vector<1xf32>
    %3 = vector.shape_cast %2 : vector<1xf32> to vector<1x1x1xf32>
    %4 = vector.extract %3[0, 0, 0] : f32 from vector<1x1x1xf32>
    %5 = vector.shape_cast %0 : vector<1x2048xf32> to vector<1x1x2048xf32>
    %cst_1 = arith.constant dense<0xFF800000> : vector<1xf32>
    %6 = vector.multi_reduction <maximumf>, %5, %cst_1 [1, 2] : vector<1x1x2048xf32> to vector<1xf32>
    %7 = vector.shape_cast %6 : vector<1xf32> to vector<1x1x1xf32>
    %8 = vector.extract %7[0, 0, 0] : f32 from vector<1x1x1xf32>
    %9 = arith.subf %8, %4 : f32
    %cst_2 = arith.constant 1.000000e+00 : f32
    %10 = arith.divf %cst_2, %9 : f32
    %11 = vector.broadcast %4 : f32 to vector<1x2048xf32>
    %12 = arith.subf %0, %11 : vector<1x2048xf32>
    %13 = vector.broadcast %10 : f32 to vector<1x2048xf32>
    %14 = arith.mulf %12, %13 : vector<1x2048xf32>
    %c0_3 = arith.constant 0 : index
    %c0_4 = arith.constant 0 : index
    %15 = vector.load %arg2[%c0_3, %c0_4] : memref<1x2048xf32, #tpu.memory_space<vmem>>, vector<1x2048xf32>
    tpu.vector_store %arg2[%c0_3, %c0_4], %14 {strides = array<i32>} : memref<1x2048xf32, #tpu.memory_space<vmem>>, vector<1x2048xf32>,
    return
  }
  func.func @transform_0(%arg0: i32) -> (i32, i32) {
    %c0_i32 = arith.constant 0 : i32
    %c0_i32_0 = arith.constant 0 : i32
    %c0_i32_1 = arith.constant 0 : i32
    return %c0_i32, %c0_i32_0 : i32, i32
  }
  func.func @transform_1(%arg0: i32) -> (i32, i32) {
    %c0_i32 = arith.constant 0 : i32
    %c0_i32_0 = arith.constant 0 : i32
    %c0_i32_1 = arith.constant 0 : i32
    return %c0_i32, %c0_i32_0 : i32, i32
  }
}

</mosaic_0001>

<bundles_post_ra>
// kernel: tpu_custom_call.1
= control target key start
LH: loop header
LB: loop body
LE: loop exit
PB: predicated region body
PF: predicated region fallthrough
CT: control target
= control target key end

     0   :  { %6 = vsyncpa [#allocation3], 0  ;;  %s339_s0 = inlined_call_operand.hbm [shape: f32[1,2048], index: 0, kind: input, shape index: {}]   ;;  %s340_s1 = inlined_call_operand.hbm [shape: f32[1,2048], index: 1, kind: output, shape index: {}]  }
   0x1   :  { %7 = vsyncpa [#allocation4], 0  ;;  %s267_s6 = smov [#allocation2]  }
   0x2   :  { %s14_s7 = sshll.u32 %s267_s6, 4  ;;  %s15_s7 = int_to_ptr.vmem [resolvable:$true] %s14_s7 }
   0x3   :  { %s231_s8 = scalar_lea.vmem %s15_s7, 256  ;;  %p236_p1 = scmp.lt.s32.totalorder %s15_s7, %s15_s7 }
   0x4   :  { %p232_p0 = scmp.ne.s32.totalorder %s15_s7, %s231_s8  ;;  %p237_p2 = scmp.lt.s32.totalorder %s231_s8, %s231_s8 }
   0x6   :  { %p238_p3 = por %p237_p2, %p236_p1 }
   0x8   :  { %p239_p4 = pnand %p238_p3, %p232_p0 }
   0xa   :  { %242 = shalt.err (!%p239_p4)
}
   0xb   :  { %17 = dma.hbm_to_vmem [thread:$0]  %s339_s0, 256, %s15_s7, [#allocation3]  }
   0xc   :  { %263 = dma.done.wait [#allocation3], 256  }
   0xd   :  { %264 = vsyncadd [#allocation3], 4294967040  ;;  %v25_v0 = vlaneseq  ;;  %v282_v10 = vld [vmem:[#allocation2] sm:$0xff]  ;;  %v284_v11 = vld [vmem:[#allocation2 + $0x8] sm:$0xff]  ;;  %vm105_vm0 = vcmask 1040384   ;;  %s268_s13 = smov [#allocation5]  }
   0xe   :  { %s204_s14 = sshll.u32 %s268_s13, 4  ;;  %s205_s14 = int_to_ptr.vmem [resolvable:$true] %s204_s14 }
   0xf   :  { %v26_v1 = vshrl.u32 %v25_v0, 7  ;;  %s243_s16 = scalar_lea.vmem %s205_s14, 256  ;;  %p248_p6 = scmp.lt.s32.totalorder %s205_s14, %s205_s14 }
  0x10   :  { %p244_p5 = scmp.ne.s32.totalorder %s205_s14, %s243_s16  ;;  %p249_p7 = scmp.lt.s32.totalorder %s243_s16, %s243_s16 }
  0x11   :  { %v27_v2 = vsub.s32 0, %v26_v1  ;;  %v31_v3 = vsub.s32 1, %v26_v1  ;;  %v35_v4 = vsub.s32 2, %v26_v1  ;;  %v39_v5 = vsub.s32 3, %v26_v1 }
  0x12   :  { %v43_v6 = vsub.s32 4, %v26_v1  ;;  %v47_v7 = vsub.s32 5, %v26_v1  ;;  %v51_v8 = vsub.s32 6, %v26_v1  ;;  %v55_v9 = vsub.s32 7, %v26_v1  ;;  %p250_p8 = por %p249_p7, %p248_p6 }
  0x13   :  { %v28_v12 = vrot.slane %v282_v10, %v27_v2  ;;  %v32_v13 = vrot.slane %v282_v10, %v31_v3  ;;  %v36_v14 = vrot.slane %v282_v10, %v35_v4  ;;  %v40_v15 = vrot.slane %v282_v10, %v39_v5 }
  0x14   :  { %v44_v16 = vrot.slane %v282_v10, %v43_v6  ;;  %v48_v17 = vrot.slane %v282_v10, %v47_v7  ;;  %v52_v18 = vrot.slane %v282_v10, %v51_v8  ;;  %v56_v19 = vrot.slane %v282_v10, %v55_v9  ;;  %p251_p9 = pnand %p250_p8, %p244_p5 }
  0x15   :  { %v60_v20 = vrot.slane %v284_v11, %v27_v2  ;;  %v64_v21 = vrot.slane %v284_v11, %v31_v3  ;;  %v68_v22 = vrot.slane %v284_v11, %v35_v4  ;;  %v72_v23 = vrot.slane %v284_v11, %v39_v5 }
  0x16   :  { %v76_v24 = vrot.slane %v284_v11, %v43_v6  ;;  %v80_v25 = vrot.slane %v284_v11, %v47_v7  ;;  %v84_v26 = vrot.slane %v284_v11, %v51_v8  ;;  %v88_v27 = vrot.slane %v284_v11, %v55_v9 }
  0x17   :  { %v106_v28 = vsel %vm105_vm0, %v28_v12, inf  ;;  %v107_v29 = vsel %vm105_vm0, %v32_v13, inf  ;;  %v108_v30 = vsel %vm105_vm0, %v36_v14, inf  ;;  %v109_v31 = vsel %vm105_vm0, %v40_v15, inf }
  0x18   :  { %v110_v32 = vsel %vm105_vm0, %v44_v16, inf  ;;  %v112_v33 = vsel %vm105_vm0, %v48_v17, inf  ;;  %v114_v34 = vsel %vm105_vm0, %v52_v18, inf  ;;  %v116_v35 = vsel %vm105_vm0, %v56_v19, inf }
  0x19   :  { %v111_v36 = vmin.f32 %v106_v28, %v110_v32  ;;  %v113_v37 = vmin.f32 %v107_v29, %v112_v33  ;;  %v115_v38 = vmin.f32 %v108_v30, %v114_v34  ;;  %v117_v39 = vmin.f32 %v109_v31, %v116_v35 }
  0x1a   :  { %v118_v40 = vsel %vm105_vm0, %v60_v20, inf  ;;  %v120_v41 = vsel %vm105_vm0, %v64_v21, inf  ;;  %v122_v42 = vsel %vm105_vm0, %v68_v22, inf  ;;  %v124_v43 = vsel %vm105_vm0, %v72_v23, inf }
  0x1b   :  { %v119_v44 = vmin.f32 %v111_v36, %v118_v40  ;;  %v121_v45 = vmin.f32 %v113_v37, %v120_v41  ;;  %v123_v46 = vmin.f32 %v115_v38, %v122_v42  ;;  %v125_v47 = vmin.f32 %v117_v39, %v124_v43 }
  0x1c   :  { %v126_v48 = vsel %vm105_vm0, %v76_v24, inf  ;;  %v128_v49 = vsel %vm105_vm0, %v80_v25, inf  ;;  %v130_v50 = vsel %vm105_vm0, %v84_v26, inf  ;;  %v132_v51 = vsel %vm105_vm0, %v88_v27, inf }
  0x1d   :  { %v127_v52 = vmin.f32 %v119_v44, %v126_v48  ;;  %v129_v53 = vmin.f32 %v121_v45, %v128_v49  ;;  %v131_v54 = vmin.f32 %v123_v46, %v130_v50  ;;  %v133_v55 = vmin.f32 %v125_v47, %v132_v51 }
  0x1e   :  { %v146_v56 = vsel %vm105_vm0, %v28_v12, -inf  ;;  %v147_v57 = vsel %vm105_vm0, %v32_v13, -inf  ;;  %v148_v58 = vsel %vm105_vm0, %v36_v14, -inf  ;;  %v149_v59 = vsel %vm105_vm0, %v40_v15, -inf }
  0x1f   :  { %v134_v60 = vmin.f32 %v127_v52, %v129_v53  ;;  %v135_v61 = vmin.f32 %v131_v54, %v133_v55  ;;  %v150_v62 = vsel %vm105_vm0, %v44_v16, -inf  ;;  %v152_v63 = vsel %vm105_vm0, %v48_v17, -inf }
  0x20   :  { %v151_v0 = vmax.f32 %v146_v56, %v150_v62  ;;  %v153_v1 = vmax.f32 %v147_v57, %v152_v63  ;;  %v154_v2 = vsel %vm105_vm0, %v52_v18, -inf  ;;  %v156_v3 = vsel %vm105_vm0, %v56_v19, -inf }
  0x21   :  { %v136_v4 = vmin.f32 %v134_v60, %v135_v61  ;;  %v155_v5 = vmax.f32 %v148_v58, %v154_v2  ;;  %v157_v6 = vmax.f32 %v149_v59, %v156_v3  ;;  %v158_v7 = vsel %vm105_vm0, %v60_v20, -inf }
  0x22   :  { %v159_v8 = vmax.f32 %v151_v0, %v158_v7  ;;  %v160_v9 = vsel %vm105_vm0, %v64_v21, -inf  ;;  %v162_v12 = vsel %vm105_vm0, %v68_v22, -inf  ;;  %v164_v13 = vsel %vm105_vm0, %v72_v23, -inf }
  0x23   :  { %137 = vmin.xlane.f32.xlu0 %v136_v4  ;;  %v161_v14 = vmax.f32 %v153_v1, %v160_v9  ;;  %v163_v15 = vmax.f32 %v155_v5, %v162_v12  ;;  %v165_v16 = vmax.f32 %v157_v6, %v164_v13  ;;  %v166_v17 = vsel %vm105_vm0, %v76_v24, -inf }
  0x24   :  { %v167_v18 = vmax.f32 %v159_v8, %v166_v17  ;;  %v168_v19 = vsel %vm105_vm0, %v80_v25, -inf  ;;  %v170_v28 = vsel %vm105_vm0, %v84_v26, -inf  ;;  %v172_v20 = vsel %vm105_vm0, %v88_v27, -inf }
  0x25   :  { %v169_v29 = vmax.f32 %v161_v14, %v168_v19  ;;  %v171_v30 = vmax.f32 %v163_v15, %v170_v28  ;;  %v173_v21 = vmax.f32 %v165_v16, %v172_v20 }
  0x27   :  { %v174_v31 = vmax.f32 %v167_v18, %v169_v29  ;;  %v175_v22 = vmax.f32 %v171_v30, %v173_v21 }
  0x29   :  { %v176_v32 = vmax.f32 %v174_v31, %v175_v22 }
  0x2b   :  { %177 = vmax.xlane.f32.xlu0 %v176_v32 }
  0xac   :  { %v138_v23 = vpop.xlane.xlu0 %137 }
  0xad   :  { %v139_v33 = vrot.slane %v138_v23, 4 }
  0xaf   :  { %v140_v34 = vmin.f32 %v138_v23, %v139_v33 }
  0xb1   :  { %v141_v35 = vrot.slane %v140_v34, 2 }
  0xb3   :  { %v142_v36 = vmin.f32 %v140_v34, %v141_v35 }
  0xb4   :  { %v178_v24 = vpop.xlane.xlu0 %177 }
  0xb5   :  { %v179_v37 = vrot.slane %v178_v24, 4  ;;  %v143_v38 = vrot.slane %v142_v36, 1 }
  0xb7   :  { %v180_v25 = vmax.f32 %v178_v24, %v179_v37  ;;  %v144_v39 = vmin.f32 %v142_v36, %v143_v38 }
  0xb9   :  { %v181_v26 = vrot.slane %v180_v25, 2  ;;  %213 = vpush %v144_v39 }
  0xbb   :  { %v182_v27 = vmax.f32 %v180_v25, %v181_v26 }
  0xbd   :  { %v183_v40 = vrot.slane %v182_v27, 1 }
  0xbf   :  { %v184_v41 = vmax.f32 %v182_v27, %v183_v40 }
  0xc1   :  { %215 = vpush %v184_v41 }
  0xea   :  { %s214_s0 = spop %213 }
  0xeb   :  { %v190_v44 = vstv %s214_s0 }
  0xec   :  { %v191_v45 = vsub.f32 %v282_v10, %v190_v44  ;;  %v192_v46 = vsub.f32 %v284_v11, %v190_v44 }
  0xf2   :  { %s216_s11 = spop %215 }
  0xf3   :  { %s186_s12 = ssub.f32 %s216_s11, %s214_s0 }
  0xf5   :  { %v187_v42 = vstv %s186_s12 }
  0xf6   :  { %221 = vrcp.f32 %v187_v42 }
 0x103   :  { %v222_v43 = vpop.eup %221 }
 0x104   :  { %217 = vpush %v222_v43 }
 0x135   :  { %s218_s15 = spop %217 }
 0x136   :  { %v193_v47 = vstv %s218_s15 }
 0x137   :  { %v194_v48 = vmul.f32 %v193_v47, %v191_v45  ;;  %v195_v49 = vmul.f32 %v193_v47, %v192_v46 }
 0x139   :  { %196 = vst [vmem:[#allocation5] sm:$0xff] %v194_v48  ;;  %197 = vst [vmem:[#allocation5 + $0x8] sm:$0xff] %v195_v49 }
 0x13a   :  { %254 = shalt.err (!%p251_p9)
}
 0x13b   :  { %207 = dma.vmem_to_hbm [thread:$0]  %s205_s14, 256, %s340_s1, [#allocation4]  }
 0x13c   :  { %265 = dma.done.wait [#allocation4], 256  }
 0x13d   :  { %266 = vsyncadd [#allocation4], 4294967040 }
 0x13e   :  { %211 = vsyncpa [#allocation3], 1 }
 0x13f   :  { %212 = vsyncpa [#allocation4], 1 }

</bundles_post_ra>
